<compile_context>
chip_gen: v7x
topology: tpu7x:2x2x1
jax: 0.10.0
libtpu: 0.0.40
codegen_flags: <defaults>
</compile_context>

<pallas_src>
import functools

import jax
import jax.numpy as jnp
import numpy as np
from jax import lax
from jax.experimental import pallas as pl
from jax.experimental.pallas import tpu as pltpu

EPS = 1e-5
LANE = 128
STATS_ROWS = 8  # sublane-aligned stats block: row 0 = sum, row 1 = sum of squares


def _round_up(x, m):
    return (x + m - 1) // m * m


# ----------------------------- kernels -----------------------------

def _matmul_stats_kernel(x_ref, w_ref, y_ref, stats_ref):
    """y = x @ W.T (W in (out,in) layout); accumulate per-feature sum / sumsq over rows."""
    y = lax.dot_general(
        x_ref[...], w_ref[...],
        dimension_numbers=(((1,), (1,)), ((), ())),   # contract on axis 1 of both
        preferred_element_type=jnp.float32)
    y_ref[...] = y.astype(y_ref.dtype)

    @pl.when(pl.program_id(1) == 0)
    def _():
        stats_ref[...] = jnp.zeros_like(stats_ref)

    stats_ref[0:1, :] += jnp.sum(y, axis=0, keepdims=True)
    stats_ref[1:2, :] += jnp.sum(y * y, axis=0, keepdims=True)


def _fused_bn_prelu_matmul_stats_kernel(y_ref, scale_ref, shift_ref, alpha_ref, w_ref,
                                        z_ref, stats_ref, *, compute_dtype):
    """h = PReLU(y*scale + shift); z = h @ W.T; accumulate per-feature sum / sumsq of z."""
    h = y_ref[...].astype(jnp.float32) * scale_ref[...] + shift_ref[...]   # folded BN
    alpha = alpha_ref[0]
    h = jnp.where(h > 0, h, alpha * h)                                     # PReLU
    z = lax.dot_general(
        h.astype(compute_dtype), w_ref[...],
        dimension_numbers=(((1,), (1,)), ((), ())),
        preferred_element_type=jnp.float32)
    z_ref[...] = z.astype(z_ref.dtype)

    @pl.when(pl.program_id(1) == 0)
    def _():
        stats_ref[...] = jnp.zeros_like(stats_ref)

    stats_ref[0:1, :] += jnp.sum(z, axis=0, keepdims=True)
    stats_ref[1:2, :] += jnp.sum(z * z, axis=0, keepdims=True)


def _bn_prelu_kernel(y_ref, scale_ref, shift_ref, alpha_ref, o_ref):
    """Final folded BN + PReLU."""
    h = y_ref[...].astype(jnp.float32) * scale_ref[...] + shift_ref[...]
    alpha = alpha_ref[0]
    o_ref[...] = jnp.where(h > 0, h, alpha * h).astype(o_ref.dtype)


# ----------------------------- wrapper -----------------------------

@functools.partial(jax.jit, static_argnames=("tile_n", "matmul_dtype"))
def default_nn_forward(x, w1, w2, w3, gammas, betas, alphas, *,
                       tile_n=None, matmul_dtype=jnp.bfloat16):
    """x: (N, D_in) f32.  wK: PyTorch-layout (out, in).  Returns (N, hidden) f32."""
    n, d_in = x.shape
    hdim = w1.shape[0]
    f32 = jnp.float32
    cdt = jnp.dtype(matmul_dtype)
    act_dt = cdt                       # inter-layer activation storage dtype

    # ---- generation-aware sizing (trace-time, static) ----
    try:
        vmem_cap = int(pltpu.get_tpu_info().vmem_capacity_bytes)
    except Exception:
        vmem_cap = 64 * 1024 * 1024
    vmem_limit = int(min(0.7 * vmem_cap, 100 * 1024 * 1024))
    if tile_n is None:
        tile_n = 1024 if vmem_cap >= 100 * 1024 * 1024 else 512

    # Packed-tile minimum for the second-to-last dim: f32 -> 8, bf16 -> 16, 8-bit -> 32.
    pack = max(8, 32 // cdt.itemsize)
    d_pad = _round_up(d_in, LANE)
    h_pad = _round_up(hdim, LANE)
    tn = _round_up(min(tile_n, max(n, 1)), pack)

    n_tiles = _round_up(n, tn) // tn
    ncores = 2 if n_tiles >= 2 else 1          # leading "parallel" core axis (v7x megacore)
    n_tiles = _round_up(n_tiles, ncores)
    rows_per_core = n_tiles // ncores
    n_pad = n_tiles * tn
    n_extra = n_pad - n                        # padded rows (all identical per layer)

    xp = jnp.zeros((n_pad, d_pad), cdt).at[:n, :d_in].set(x.astype(cdt))
    w1p = jnp.zeros((h_pad, d_pad), cdt).at[:hdim, :d_in].set(w1.astype(cdt))
    w2p = jnp.zeros((h_pad, h_pad), cdt).at[:hdim, :hdim].set(w2.astype(cdt))
    w3p = jnp.zeros((h_pad, h_pad), cdt).at[:hdim, :hdim].set(w3.astype(cdt))
    gp = jnp.zeros((3, h_pad), f32).at[:, :hdim].set(gammas.astype(f32))   # padded gamma=0
    bp = jnp.zeros((3, h_pad), f32).at[:, :hdim].set(betas.astype(f32))    # padded beta=0
    al = alphas.astype(f32)
    n_f = float(n)

    cp_mm = pltpu.CompilerParams(dimension_semantics=("parallel", "arbitrary"),
                                 vmem_limit_bytes=vmem_limit)
    cp_ew = pltpu.CompilerParams(dimension_semantics=("parallel", "parallel"),
                                 vmem_limit_bytes=vmem_limit)

    grid = (ncores, rows_per_core)
    row_map = lambda c, i: (c * rows_per_core + i, 0)
    bcast_map = lambda c, i: (0, 0)
    stats_map = lambda c, i: (c, 0)            # per-core partial stats (no cross-core races)

    stats_shape = jax.ShapeDtypeStruct((ncores * STATS_ROWS, h_pad), f32)
    stats_spec = pl.BlockSpec((STATS_ROWS, h_pad), stats_map)
    smem_spec = pl.BlockSpec(memory_space=pltpu.MemorySpace.SMEM)

    def _combine_stats(st_raw):
        st = st_raw.reshape(ncores, STATS_ROWS, h_pad).sum(axis=0)
        return st[0], st[1]

    def _scale_shift(s, ss, gamma, beta):
        mean = s / n_f
        var = jnp.maximum(ss / n_f - mean * mean, 0.0)   # biased variance, one-pass form
        scale = gamma * lax.rsqrt(var + EPS)
        shift = beta - mean * scale
        return scale[None, :], shift[None, :]

    def _prelu(v, a):
        return jnp.where(v > 0, v, a * v)

    def _pad_row_out(y_pad_row, scale, shift, alpha, wp):
        # z produced by one (constant) padded row inside the fused kernel, recomputed in
        # the wrapper with the same dtype path so stats can be corrected analytically.
        h = y_pad_row.astype(f32) * scale[0] + shift[0]
        p = _prelu(h, alpha)
        z = lax.dot_general(p.astype(cdt)[None, :], wp,
                            dimension_numbers=(((1,), (1,)), ((), ())),
                            preferred_element_type=f32)
        return z[0]

    # ---- layer 1: matmul + stats (padded x rows are exactly zero -> no correction) ----
    y1, st1 = pl.pallas_call(
        _matmul_stats_kernel,
        grid=grid,
        in_specs=[
            pl.BlockSpec((tn, d_pad), row_map),
            pl.BlockSpec((h_pad, d_pad), bcast_map),
        ],
        out_specs=[
            pl.BlockSpec((tn, h_pad), row_map),
            stats_spec,
        ],
        out_shape=[
            jax.ShapeDtypeStruct((n_pad, h_pad), act_dt),
            stats_shape,
        ],
        compiler_params=cp_mm,
        cost_estimate=pl.CostEstimate(
            flops=int(2 * n_pad * d_pad * h_pad + 4 * n_pad * h_pad),
            transcendentals=0,
            bytes_accessed=int((n_pad * d_pad + h_pad * d_pad) * cdt.itemsize
                               + n_pad * h_pad * act_dt.itemsize
                               + 2 * ncores * STATS_ROWS * h_pad * 4)),
    )(xp, w1p)
    s1, ss1 = _combine_stats(st1)
    scale1, shift1 = _scale_shift(s1, ss1, gp[0], bp[0])

    # ---- layers 2 & 3: previous BN+PReLU fused with the next matmul + stats ----
    def _fused(y, scale, shift, alpha, wp):
        return pl.pallas_call(
            functools.partial(_fused_bn_prelu_matmul_stats_kernel, compute_dtype=cdt),
            grid=grid,
            in_specs=[
                pl.BlockSpec((tn, h_pad), row_map),
                pl.BlockSpec((1, h_pad), bcast_map),
                pl.BlockSpec((1, h_pad), bcast_map),
                smem_spec,                                   # alpha (1,)
                pl.BlockSpec((h_pad, h_pad), bcast_map),
            ],
            out_specs=[
                pl.BlockSpec((tn, h_pad), row_map),
                stats_spec,
            ],
            out_shape=[
                jax.ShapeDtypeStruct((n_pad, h_pad), act_dt),
                stats_shape,
            ],
            compiler_params=cp_mm,
            cost_estimate=pl.CostEstimate(
                flops=int(2 * n_pad * h_pad * h_pad + 8 * n_pad * h_pad),
                transcendentals=0,
                bytes_accessed=int(2 * n_pad * h_pad * act_dt.itemsize
                                   + h_pad * h_pad * cdt.itemsize
                                   + (2 + 2 * ncores * STATS_ROWS) * h_pad * 4)),
        )(y, scale, shift, alpha, wp)

    y2, st2 = _fused(y1, scale1, shift1, al[0:1], w2p)
    s2, ss2 = _combine_stats(st2)
    if n_extra:
        r2 = _pad_row_out(jnp.zeros((h_pad,), act_dt), scale1, shift1, al[0], w2p)
        s2 = s2 - n_extra * r2
        ss2 = ss2 - n_extra * r2 * r2
    scale2, shift2 = _scale_shift(s2, ss2, gp[1], bp[1])

    y3, st3 = _fused(y2, scale2, shift2, al[1:2], w3p)
    s3, ss3 = _combine_stats(st3)
    if n_extra:
        r3 = _pad_row_out(r2.astype(act_dt), scale2, shift2, al[1], w3p)
        s3 = s3 - n_extra * r3
        ss3 = ss3 - n_extra * r3 * r3
    scale3, shift3 = _scale_shift(s3, ss3, gp[2], bp[2])

    # ---- final BN + PReLU apply (independent row tiles -> fully parallel) ----
    out = pl.pallas_call(
        _bn_prelu_kernel,
        grid=grid,
        in_specs=[
            pl.BlockSpec((tn, h_pad), row_map),
            pl.BlockSpec((1, h_pad), bcast_map),
            pl.BlockSpec((1, h_pad), bcast_map),
            smem_spec,
        ],
        out_specs=pl.BlockSpec((tn, h_pad), row_map),
        out_shape=jax.ShapeDtypeStruct((n_pad, h_pad), f32),
        compiler_params=cp_ew,
        cost_estimate=pl.CostEstimate(
            flops=int(4 * n_pad * h_pad),
            transcendentals=0,
            bytes_accessed=int(n_pad * h_pad * (act_dt.itemsize + 4) + 2 * h_pad * 4)),
    )(y3, scale3, shift3, al[2:3])

    return out[:n, :hdim]


# ----------------------------- reference -----------------------------

def default_nn_ref(x, w1, w2, w3, gammas, betas, alphas):
    """Pure-JAX reference mirroring PyTorch training-mode forward."""
    h = x
    for i, w in enumerate((w1, w2, w3)):
        y = h @ w.T
        mean = jnp.mean(y, axis=0, keepdims=True)
        var = jnp.mean((y - mean) ** 2, axis=0, keepdims=True)
        y_hat = (y - mean) / jnp.sqrt(var + EPS)
        y_hat = y_hat * gammas[i][None, :] + betas[i][None, :]
        h = jnp.where(y_hat > 0, y_hat, alphas[i] * y_hat)
    return h


if __name__ == "__main__":
    N, D_IN, HIDDEN = 8, 16, 32

    key = jax.random.PRNGKey(0)
    kx, k1, k2, k3 = jax.random.split(key, 4)

    x = jax.random.normal(kx, (N, D_IN), dtype=jnp.float32)

    # PyTorch layout (out, in) Linear weights; standard BN / PReLU inits.
    w1 = jax.random.uniform(k1, (HIDDEN, D_IN), jnp.float32, -1.0, 1.0) / jnp.sqrt(D_IN)
    w2 = jax.random.uniform(k2, (HIDDEN, HIDDEN), jnp.float32, -1.0, 1.0) / jnp.sqrt(HIDDEN)
    w3 = jax.random.uniform(k3, (HIDDEN, HIDDEN), jnp.float32, -1.0, 1.0) / jnp.sqrt(HIDDEN)
    gammas = jnp.ones((3, HIDDEN), jnp.float32)
    betas = jnp.zeros((3, HIDDEN), jnp.float32)
    alphas = jnp.full((3,), 0.25, jnp.float32)

    # Default (bf16 MXU operands, bf16 intermediates): single-tile path with the
    # analytic padded-row stats correction.  Tolerance reflects bf16 operands.
    out = jax.block_until_ready(default_nn_forward(x, w1, w2, w3, gammas, betas, alphas))
    ref = default_nn_ref(x, w1, w2, w3, gammas, betas, alphas)
    np.testing.assert_allclose(np.asarray(out), np.asarray(ref), rtol=5e-2, atol=5e-2)

    # Multi-tile path: grid > 1, two-way core split (v7x megacore layout), cross-tile BN
    # stats accumulation, padded-row correction, non-trivial gamma/beta/alpha; f32 MXU.
    # Tolerance kept loose to be robust to the backend's default f32 matmul precision.
    N2 = 200
    kk = jax.random.split(jax.random.PRNGKey(1), 4)
    x2 = jax.random.normal(kk[0], (N2, D_IN), dtype=jnp.float32)
    gammas2 = 1.0 + 0.1 * jax.random.normal(kk[1], (3, HIDDEN), jnp.float32)
    betas2 = 0.1 * jax.random.normal(kk[2], (3, HIDDEN), jnp.float32)
    alphas2 = jnp.array([0.25, 0.1, 0.5], jnp.float32)
    out2 = jax.block_until_ready(
        default_nn_forward(x2, w1, w2, w3, gammas2, betas2, alphas2,
                           tile_n=64, matmul_dtype=jnp.float32))
    ref2 = default_nn_ref(x2, w1, w2, w3, gammas2, betas2, alphas2)
    np.testing.assert_allclose(np.asarray(out2), np.asarray(ref2), rtol=5e-2, atol=5e-2)

    print("KERNEL_OK")
</pallas_src>

<mosaic_0001>
module attributes {stable_mosaic.version = 11 : i64} {
  func.func @_matmul_stats_kernel(%arg0: i32, %arg1: i32, %arg2: memref<16x128xbf16, #tpu.memory_space<vmem>>, %arg3: memref<128x128xbf16, #tpu.memory_space<vmem>>, %arg4: memref<16x128xbf16, #tpu.memory_space<vmem>>, %arg5: memref<8x128xf32, #tpu.memory_space<vmem>>) attributes {dimension_semantics = [#tpu.dimension_semantics<parallel>, #tpu.dimension_semantics<arbitrary>], iteration_bounds = array<i64: 1, 1>, scalar_prefetch = 0 : i64, scratch_operands = 0 : i64, tpu.core_type = #tpu.core_type<tc>, window_params = [{transform_indices = @transform_0, window_bounds = array<i64: 16, 128>}, {pipeline_mode = #tpu.pipeline_mode<synchronous>, transform_indices = @transform_1, window_bounds = array<i64: 128, 128>}, {transform_indices = @transform_2, window_bounds = array<i64: 16, 128>}, {transform_indices = @transform_3, window_bounds = array<i64: 8, 128>}]} {
    %c0 = arith.constant 0 : index
    %c0_0 = arith.constant 0 : index
    %0 = vector.load %arg2[%c0, %c0_0] : memref<16x128xbf16, #tpu.memory_space<vmem>>, vector<16x128xbf16>
    %c0_1 = arith.constant 0 : index
    %c0_2 = arith.constant 0 : index
    %1 = vector.load %arg3[%c0_1, %c0_2] : memref<128x128xbf16, #tpu.memory_space<vmem>>, vector<128x128xbf16>
    %cst = arith.constant dense<0.000000e+00> : vector<16x128xf32>
    %2 = tpu.matmul %0, %1, %cst {dimension_numbers = #tpu.dot_dimension_numbers<[1], [1], [0], [0], [0, 0, 1, 0], [], []>} : vector<16x128xbf16>, vector<128x128xbf16>, vector<16x128xf32> -> vector<16x128xf32>
    %3 = arith.truncf %2 : vector<16x128xf32> to vector<16x128xbf16>
    %c0_3 = arith.constant 0 : index
    %c0_4 = arith.constant 0 : index
    %4 = vector.load %arg4[%c0_3, %c0_4] : memref<16x128xbf16, #tpu.memory_space<vmem>>, vector<16x128xbf16>
    tpu.vector_store %arg4[%c0_3, %c0_4], %3 {strides = array<i32>} : memref<16x128xbf16, #tpu.memory_space<vmem>>, vector<16x128xbf16>,
    %c0_i32 = arith.constant 0 : i32
    %5 = arith.cmpi eq, %arg1, %c0_i32 : i32
    %6 = arith.extui %5 : i1 to i32
    %c0_i32_5 = arith.constant 0 : i32
    %7 = arith.cmpi ne, %6, %c0_i32_5 : i32
    scf.if %7 {
      %cst_15 = arith.constant 0.000000e+00 : f32
      %19 = vector.broadcast %cst_15 : f32 to vector<8x128xf32>
      %c0_16 = arith.constant 0 : index
      %c0_17 = arith.constant 0 : index
      %20 = vector.load %arg5[%c0_16, %c0_17] : memref<8x128xf32, #tpu.memory_space<vmem>>, vector<8x128xf32>
      tpu.vector_store %arg5[%c0_16, %c0_17], %19 {strides = array<i32>} : memref<8x128xf32, #tpu.memory_space<vmem>>, vector<8x128xf32>,
    } else {
    }
    %c0_6 = arith.constant 0 : index
    %c0_7 = arith.constant 0 : index
    %8 = vector.load %arg5[%c0_6, %c0_7] : memref<8x128xf32, #tpu.memory_space<vmem>>, vector<1x128xf32>
    %cst_8 = arith.constant dense<0.000000e+00> : vector<128xf32>
    %9 = vector.multi_reduction <add>, %2, %cst_8 [0] : vector<16x128xf32> to vector<128xf32>
    %10 = vector.shape_cast %9 : vector<128xf32> to vector<1x128xf32>
    %11 = arith.addf %8, %10 : vector<1x128xf32>
    %c0_9 = arith.constant 0 : index
    %c0_10 = arith.constant 0 : index
    %12 = vector.load %arg5[%c0_9, %c0_10] : memref<8x128xf32, #tpu.memory_space<vmem>>, vector<1x128xf32>
    tpu.vector_store %arg5[%c0_9, %c0_10], %11 {strides = array<i32>} : memref<8x128xf32, #tpu.memory_space<vmem>>, vector<1x128xf32>,
    %c1 = arith.constant 1 : index
    %c0_11 = arith.constant 0 : index
    %13 = vector.load %arg5[%c1, %c0_11] : memref<8x128xf32, #tpu.memory_space<vmem>>, vector<1x128xf32>
    %14 = arith.mulf %2, %2 : vector<16x128xf32>
    %cst_12 = arith.constant dense<0.000000e+00> : vector<128xf32>
    %15 = vector.multi_reduction <add>, %14, %cst_12 [0] : vector<16x128xf32> to vector<128xf32>
    %16 = vector.shape_cast %15 : vector<128xf32> to vector<1x128xf32>
    %17 = arith.addf %13, %16 : vector<1x128xf32>
    %c1_13 = arith.constant 1 : index
    %c0_14 = arith.constant 0 : index
    %18 = vector.load %arg5[%c1_13, %c0_14] : memref<8x128xf32, #tpu.memory_space<vmem>>, vector<1x128xf32>
    tpu.vector_store %arg5[%c1_13, %c0_14], %17 {strides = array<i32>} : memref<8x128xf32, #tpu.memory_space<vmem>>, vector<1x128xf32>,
    return
  }
  func.func @transform_0(%arg0: i32, %arg1: i32) -> (i32, i32) {
    %c1_i32 = arith.constant 1 : i32
    %0 = arith.muli %arg0, %c1_i32 : i32
    %1 = arith.addi %0, %arg1 : i32
    %c0_i32 = arith.constant 0 : i32
    %c0_i32_0 = arith.constant 0 : i32
    return %1, %c0_i32 : i32, i32
  }
  func.func @transform_1(%arg0: i32, %arg1: i32) -> (i32, i32) {
    %c0_i32 = arith.constant 0 : i32
    %c0_i32_0 = arith.constant 0 : i32
    %c0_i32_1 = arith.constant 0 : i32
    return %c0_i32, %c0_i32_0 : i32, i32
  }
  func.func @transform_2(%arg0: i32, %arg1: i32) -> (i32, i32) {
    %c1_i32 = arith.constant 1 : i32
    %0 = arith.muli %arg0, %c1_i32 : i32
    %1 = arith.addi %0, %arg1 : i32
    %c0_i32 = arith.constant 0 : i32
    %c0_i32_0 = arith.constant 0 : i32
    return %1, %c0_i32 : i32, i32
  }
  func.func @transform_3(%arg0: i32, %arg1: i32) -> (i32, i32) {
    %c0_i32 = arith.constant 0 : i32
    %c0_i32_0 = arith.constant 0 : i32
    return %arg0, %c0_i32 : i32, i32
  }
}

module attributes {stable_mosaic.version = 11 : i64} {
  func.func @_bn_prelu_kernel(%arg0: i32, %arg1: i32, %arg2: memref<16x128xbf16, #tpu.memory_space<vmem>>, %arg3: memref<1x128xf32, #tpu.memory_space<vmem>>, %arg4: memref<1x128xf32, #tpu.memory_space<vmem>>, %arg5: memref<1xf32, #tpu.memory_space<smem>>, %arg6: memref<16x128xf32, #tpu.memory_space<vmem>>) attributes {dimension_semantics = [#tpu.dimension_semantics<parallel>, #tpu.dimension_semantics<parallel>], iteration_bounds = array<i64: 1, 1>, scalar_prefetch = 0 : i64, scratch_operands = 0 : i64, tpu.core_type = #tpu.core_type<tc>, window_params = [{transform_indices = @transform_0, window_bounds = array<i64: 16, 128>}, {pipeline_mode = #tpu.pipeline_mode<synchronous>, transform_indices = @transform_1, window_bounds = array<i64: 1, 128>}, {pipeline_mode = #tpu.pipeline_mode<synchronous>, transform_indices = @transform_2, window_bounds = array<i64: 1, 128>}, {transform_indices = @transform_3, window_bounds = array<i64: 1>}, {transform_indices = @transform_4, window_bounds = array<i64: 16, 128>}]} {
    %c0 = arith.constant 0 : index
    %c0_0 = arith.constant 0 : index
    %0 = vector.load %arg2[%c0, %c0_0] : memref<16x128xbf16, #tpu.memory_space<vmem>>, vector<16x128xbf16>
    %1 = arith.extf %0 : vector<16x128xbf16> to vector<16x128xf32>
    %c0_1 = arith.constant 0 : index
    %c0_2 = arith.constant 0 : index
    %2 = vector.load %arg3[%c0_1, %c0_2] : memref<1x128xf32, #tpu.memory_space<vmem>>, vector<1x128xf32>
    %3 = vector.broadcast %2 : vector<1x128xf32> to vector<16x128xf32>
    %4 = arith.mulf %1, %3 : vector<16x128xf32>
    %c0_3 = arith.constant 0 : index
    %c0_4 = arith.constant 0 : index
    %5 = vector.load %arg4[%c0_3, %c0_4] : memref<1x128xf32, #tpu.memory_space<vmem>>, vector<1x128xf32>
    %6 = vector.broadcast %5 : vector<1x128xf32> to vector<16x128xf32>
    %7 = arith.addf %4, %6 : vector<16x128xf32>
    %c0_5 = arith.constant 0 : index
    %8 = memref.load %arg5[%c0_5] : memref<1xf32, #tpu.memory_space<smem>>
    %cst = arith.constant 0.000000e+00 : f32
    %9 = vector.broadcast %cst : f32 to vector<16x128xf32>
    %10 = arith.cmpf ogt, %7, %9 : vector<16x128xf32>
    %11 = vector.broadcast %8 : f32 to vector<16x128xf32>
    %12 = arith.mulf %11, %7 : vector<16x128xf32>
    %13 = arith.select %10, %7, %12 : vector<16x128xi1>, vector<16x128xf32>
    %c0_6 = arith.constant 0 : index
    %c0_7 = arith.constant 0 : index
    %14 = vector.load %arg6[%c0_6, %c0_7] : memref<16x128xf32, #tpu.memory_space<vmem>>, vector<16x128xf32>
    tpu.vector_store %arg6[%c0_6, %c0_7], %13 {strides = array<i32>} : memref<16x128xf32, #tpu.memory_space<vmem>>, vector<16x128xf32>,
    return
  }
  func.func @transform_0(%arg0: i32, %arg1: i32) -> (i32, i32) {
    %c1_i32 = arith.constant 1 : i32
    %0 = arith.muli %arg0, %c1_i32 : i32
    %1 = arith.addi %0, %arg1 : i32
    %c0_i32 = arith.constant 0 : i32
    %c0_i32_0 = arith.constant 0 : i32
    return %1, %c0_i32 : i32, i32
  }
  func.func @transform_1(%arg0: i32, %arg1: i32) -> (i32, i32) {
    %c0_i32 = arith.constant 0 : i32
    %c0_i32_0 = arith.constant 0 : i32
    %c0_i32_1 = arith.constant 0 : i32
    return %c0_i32, %c0_i32_0 : i32, i32
  }
  func.func @transform_2(%arg0: i32, %arg1: i32) -> (i32, i32) {
    %c0_i32 = arith.constant 0 : i32
    %c0_i32_0 = arith.constant 0 : i32
    %c0_i32_1 = arith.constant 0 : i32
    return %c0_i32, %c0_i32_0 : i32, i32
  }
  func.func @transform_3(%arg0: i32, %arg1: i32) -> i32 {
    %c0_i32 = arith.constant 0 : i32
    %c0_i32_0 = arith.constant 0 : i32
    return %c0_i32 : i32
  }
  func.func @transform_4(%arg0: i32, %arg1: i32) -> (i32, i32) {
    %c1_i32 = arith.constant 1 : i32
    %0 = arith.muli %arg0, %c1_i32 : i32
    %1 = arith.addi %0, %arg1 : i32
    %c0_i32 = arith.constant 0 : i32
    %c0_i32_0 = arith.constant 0 : i32
    return %1, %c0_i32 : i32, i32
  }
}

module attributes {stable_mosaic.version = 11 : i64} {
  func.func @_fused_bn_prelu_matmul_stats_kernel(%arg0: i32, %arg1: i32, %arg2: memref<16x128xbf16, #tpu.memory_space<vmem>>, %arg3: memref<1x128xf32, #tpu.memory_space<vmem>>, %arg4: memref<1x128xf32, #tpu.memory_space<vmem>>, %arg5: memref<1xf32, #tpu.memory_space<smem>>, %arg6: memref<128x128xbf16, #tpu.memory_space<vmem>>, %arg7: memref<16x128xbf16, #tpu.memory_space<vmem>>, %arg8: memref<8x128xf32, #tpu.memory_space<vmem>>) attributes {dimension_semantics = [#tpu.dimension_semantics<parallel>, #tpu.dimension_semantics<arbitrary>], iteration_bounds = array<i64: 1, 1>, scalar_prefetch = 0 : i64, scratch_operands = 0 : i64, tpu.core_type = #tpu.core_type<tc>, window_params = [{transform_indices = @transform_0, window_bounds = array<i64: 16, 128>}, {pipeline_mode = #tpu.pipeline_mode<synchronous>, transform_indices = @transform_1, window_bounds = array<i64: 1, 128>}, {pipeline_mode = #tpu.pipeline_mode<synchronous>, transform_indices = @transform_2, window_bounds = array<i64: 1, 128>}, {transform_indices = @transform_3, window_bounds = array<i64: 1>}, {pipeline_mode = #tpu.pipeline_mode<synchronous>, transform_indices = @transform_4, window_bounds = array<i64: 128, 128>}, {transform_indices = @transform_5, window_bounds = array<i64: 16, 128>}, {transform_indices = @transform_6, window_bounds = array<i64: 8, 128>}]} {
    %c0 = arith.constant 0 : index
    %c0_0 = arith.constant 0 : index
    %0 = vector.load %arg2[%c0, %c0_0] : memref<16x128xbf16, #tpu.memory_space<vmem>>, vector<16x128xbf16>
    %1 = arith.extf %0 : vector<16x128xbf16> to vector<16x128xf32>
    %c0_1 = arith.constant 0 : index
    %c0_2 = arith.constant 0 : index
    %2 = vector.load %arg3[%c0_1, %c0_2] : memref<1x128xf32, #tpu.memory_space<vmem>>, vector<1x128xf32>
    %3 = vector.broadcast %2 : vector<1x128xf32> to vector<16x128xf32>
    %4 = arith.mulf %1, %3 : vector<16x128xf32>
    %c0_3 = arith.constant 0 : index
    %c0_4 = arith.constant 0 : index
    %5 = vector.load %arg4[%c0_3, %c0_4] : memref<1x128xf32, #tpu.memory_space<vmem>>, vector<1x128xf32>
    %6 = vector.broadcast %5 : vector<1x128xf32> to vector<16x128xf32>
    %7 = arith.addf %4, %6 : vector<16x128xf32>
    %c0_5 = arith.constant 0 : index
    %8 = memref.load %arg5[%c0_5] : memref<1xf32, #tpu.memory_space<smem>>
    %cst = arith.constant 0.000000e+00 : f32
    %9 = vector.broadcast %cst : f32 to vector<16x128xf32>
    %10 = arith.cmpf ogt, %7, %9 : vector<16x128xf32>
    %11 = vector.broadcast %8 : f32 to vector<16x128xf32>
    %12 = arith.mulf %11, %7 : vector<16x128xf32>
    %13 = arith.select %10, %7, %12 : vector<16x128xi1>, vector<16x128xf32>
    %14 = arith.truncf %13 : vector<16x128xf32> to vector<16x128xbf16>
    %c0_6 = arith.constant 0 : index
    %c0_7 = arith.constant 0 : index
    %15 = vector.load %arg6[%c0_6, %c0_7] : memref<128x128xbf16, #tpu.memory_space<vmem>>, vector<128x128xbf16>
    %cst_8 = arith.constant dense<0.000000e+00> : vector<16x128xf32>
    %16 = tpu.matmul %14, %15, %cst_8 {dimension_numbers = #tpu.dot_dimension_numbers<[1], [1], [0], [0], [0, 0, 1, 0], [], []>} : vector<16x128xbf16>, vector<128x128xbf16>, vector<16x128xf32> -> vector<16x128xf32>
    %17 = arith.truncf %16 : vector<16x128xf32> to vector<16x128xbf16>
    %c0_9 = arith.constant 0 : index
    %c0_10 = arith.constant 0 : index
    %18 = vector.load %arg7[%c0_9, %c0_10] : memref<16x128xbf16, #tpu.memory_space<vmem>>, vector<16x128xbf16>
    tpu.vector_store %arg7[%c0_9, %c0_10], %17 {strides = array<i32>} : memref<16x128xbf16, #tpu.memory_space<vmem>>, vector<16x128xbf16>,
    %c0_i32 = arith.constant 0 : i32
    %19 = arith.cmpi eq, %arg1, %c0_i32 : i32
    %20 = arith.extui %19 : i1 to i32
    %c0_i32_11 = arith.constant 0 : i32
    %21 = arith.cmpi ne, %20, %c0_i32_11 : i32
    scf.if %21 {
      %cst_21 = arith.constant 0.000000e+00 : f32
      %33 = vector.broadcast %cst_21 : f32 to vector<8x128xf32>
      %c0_22 = arith.constant 0 : index
      %c0_23 = arith.constant 0 : index
      %34 = vector.load %arg8[%c0_22, %c0_23] : memref<8x128xf32, #tpu.memory_space<vmem>>, vector<8x128xf32>
      tpu.vector_store %arg8[%c0_22, %c0_23], %33 {strides = array<i32>} : memref<8x128xf32, #tpu.memory_space<vmem>>, vector<8x128xf32>,
    } else {
    }
    %c0_12 = arith.constant 0 : index
    %c0_13 = arith.constant 0 : index
    %22 = vector.load %arg8[%c0_12, %c0_13] : memref<8x128xf32, #tpu.memory_space<vmem>>, vector<1x128xf32>
    %cst_14 = arith.constant dense<0.000000e+00> : vector<128xf32>
    %23 = vector.multi_reduction <add>, %16, %cst_14 [0] : vector<16x128xf32> to vector<128xf32>
    %24 = vector.shape_cast %23 : vector<128xf32> to vector<1x128xf32>
    %25 = arith.addf %22, %24 : vector<1x128xf32>
    %c0_15 = arith.constant 0 : index
    %c0_16 = arith.constant 0 : index
    %26 = vector.load %arg8[%c0_15, %c0_16] : memref<8x128xf32, #tpu.memory_space<vmem>>, vector<1x128xf32>
    tpu.vector_store %arg8[%c0_15, %c0_16], %25 {strides = array<i32>} : memref<8x128xf32, #tpu.memory_space<vmem>>, vector<1x128xf32>,
    %c1 = arith.constant 1 : index
    %c0_17 = arith.constant 0 : index
    %27 = vector.load %arg8[%c1, %c0_17] : memref<8x128xf32, #tpu.memory_space<vmem>>, vector<1x128xf32>
    %28 = arith.mulf %16, %16 : vector<16x128xf32>
    %cst_18 = arith.constant dense<0.000000e+00> : vector<128xf32>
    %29 = vector.multi_reduction <add>, %28, %cst_18 [0] : vector<16x128xf32> to vector<128xf32>
    %30 = vector.shape_cast %29 : vector<128xf32> to vector<1x128xf32>
    %31 = arith.addf %27, %30 : vector<1x128xf32>
    %c1_19 = arith.constant 1 : index
    %c0_20 = arith.constant 0 : index
    %32 = vector.load %arg8[%c1_19, %c0_20] : memref<8x128xf32, #tpu.memory_space<vmem>>, vector<1x128xf32>
    tpu.vector_store %arg8[%c1_19, %c0_20], %31 {strides = array<i32>} : memref<8x128xf32, #tpu.memory_space<vmem>>, vector<1x128xf32>,
    return
  }
  func.func @transform_0(%arg0: i32, %arg1: i32) -> (i32, i32) {
    %c1_i32 = arith.constant 1 : i32
    %0 = arith.muli %arg0, %c1_i32 : i32
    %1 = arith.addi %0, %arg1 : i32
    %c0_i32 = arith.constant 0 : i32
    %c0_i32_0 = arith.constant 0 : i32
    return %1, %c0_i32 : i32, i32
  }
  func.func @transform_1(%arg0: i32, %arg1: i32) -> (i32, i32) {
    %c0_i32 = arith.constant 0 : i32
    %c0_i32_0 = arith.constant 0 : i32
    %c0_i32_1 = arith.constant 0 : i32
    return %c0_i32, %c0_i32_0 : i32, i32
  }
  func.func @transform_2(%arg0: i32, %arg1: i32) -> (i32, i32) {
    %c0_i32 = arith.constant 0 : i32
    %c0_i32_0 = arith.constant 0 : i32
    %c0_i32_1 = arith.constant 0 : i32
    return %c0_i32, %c0_i32_0 : i32, i32
  }
  func.func @transform_3(%arg0: i32, %arg1: i32) -> i32 {
    %c0_i32 = arith.constant 0 : i32
    %c0_i32_0 = arith.constant 0 : i32
    return %c0_i32 : i32
  }
  func.func @transform_4(%arg0: i32, %arg1: i32) -> (i32, i32) {
    %c0_i32 = arith.constant 0 : i32
    %c0_i32_0 = arith.constant 0 : i32
    %c0_i32_1 = arith.constant 0 : i32
    return %c0_i32, %c0_i32_0 : i32, i32
  }
  func.func @transform_5(%arg0: i32, %arg1: i32) -> (i32, i32) {
    %c1_i32 = arith.constant 1 : i32
    %0 = arith.muli %arg0, %c1_i32 : i32
    %1 = arith.addi %0, %arg1 : i32
    %c0_i32 = arith.constant 0 : i32
    %c0_i32_0 = arith.constant 0 : i32
    return %1, %c0_i32 : i32, i32
  }
  func.func @transform_6(%arg0: i32, %arg1: i32) -> (i32, i32) {
    %c0_i32 = arith.constant 0 : i32
    %c0_i32_0 = arith.constant 0 : i32
    return %arg0, %c0_i32 : i32, i32
  }
}

</mosaic_0001>

<bundles_post_ra>
// kernel: default_nn_forward.4
= control target key start
LH: loop header
LB: loop body
LE: loop exit
PB: predicated region body
PF: predicated region fallthrough
CT: control target
= control target key end

     0   :  { %v294_v0 = vmov 0.0   ;;  %vm295_vm0 = vmmov 0   ;;  %s361_s1 = inlined_call_operand.vmem [shape: bf16[128,128], index: 1, kind: input, shape index: {}]   ;;  %s362_s0 = inlined_call_operand.vmem [shape: bf16[16,128], index: 0, kind: input, shape index: {}]   ;;  %s363_s3 = inlined_call_operand.vmem [shape: f32[8,128], index: 3, kind: output, shape index: {1}]   ;;  %s364_s2 = inlined_call_operand.vmem [shape: bf16[16,128], index: 2, kind: output, shape index: {0}]  }
   0x1   :  { %263 = vmatprep.subr.bf16.mxu0 %v294_v0  ;;  %v285_v1 = vld [vmem:[%s361_s1] sm:$0xff]   ;;  %279 = vmatprep.mubr.msk.bf16.mxu0 %vm295_vm0, %v294_v0  ;;  %v286_v2 = vld [vmem:[%s361_s1 + $0x8] sm:$0xff]   ;;  %v287_v3 = vld [vmem:[%s361_s1 + $0x10] sm:$0xff]   ;;  %177 = vst [vmem:[%s363_s3] sm:$0xff] %v294_v0 }
   0x2   :  { %264 = vmatpush3.bf16.xpose.msra.mxu0 %v285_v1  ;;  %v288_v4 = vld [vmem:[%s361_s1 + $0x18] sm:$0xff]   ;;  %v289_v5 = vld [vmem:[%s361_s1 + $0x20] sm:$0xff]   ;;  %v290_v6 = vld [vmem:[%s361_s1 + $0x28] sm:$0xff]  }
   0x3   :  { %265 = vmatprep.subr.bf16.mxu0 %v294_v0  ;;  %v291_v7 = vld [vmem:[%s361_s1 + $0x30] sm:$0xff]   ;;  %v292_v8 = vld [vmem:[%s361_s1 + $0x38] sm:$0xff]   ;;  %v293_v9 = vld [vmem:[%s362_s0] sm:$0xff]  }
   0x8   :  { %v178_v28 = vld [vmem:[%s363_s3] sm:$0x1]  ;;  %v188_v31 = vld [vmem:[%s363_s3 + $0x1] sm:$0x1] }
   0xa   :  { %266 = vmatpush3.bf16.xpose.msra.mxu0 %v286_v2 }
   0xb   :  { %267 = vmatprep.subr.bf16.mxu0 %v294_v0 }
  0x12   :  { %268 = vmatpush3.bf16.xpose.msra.mxu0 %v287_v3 }
  0x13   :  { %269 = vmatprep.subr.bf16.mxu0 %v294_v0 }
  0x1a   :  { %270 = vmatpush3.bf16.xpose.msra.mxu0 %v288_v4 }
  0x1b   :  { %271 = vmatprep.subr.bf16.mxu0 %v294_v0 }
  0x22   :  { %272 = vmatpush3.bf16.xpose.msra.mxu0 %v289_v5 }
  0x23   :  { %273 = vmatprep.subr.bf16.mxu0 %v294_v0 }
  0x2a   :  { %274 = vmatpush3.bf16.xpose.msra.mxu0 %v290_v6 }
  0x2b   :  { %275 = vmatprep.subr.bf16.mxu0 %v294_v0 }
  0x32   :  { %276 = vmatpush3.bf16.xpose.msra.mxu0 %v291_v7 }
  0x33   :  { %277 = vmatprep.subr.bf16.mxu0 %v294_v0 }
  0x3a   :  { %278 = vmatpush3.bf16.xpose.msra.mxu0 %v292_v8 }
  0x41   :  { %280 = vmatmul.mubr.bf16.vlgmr.msra.gmra.mrb[0].mxu0 %v293_v9 }
 0x114   :  { %v156_v10 = vpop.f32.mrb[0].mxu0 }
 0x115   :  { %v281_v11 = vpop.f32.mrb[1].mxu0  ;;  %v189_v13 = vmul.f32 %v156_v10, %v156_v10 }
 0x116   :  { %v159_v12 = vpop.f32.mrb[2].mxu0 }
 0x117   :  { %v252_v14 = vpack.c.bf16 %v159_v12, %v156_v10  ;;  %v179_v15 = vadd.f32 %v159_v12, %v156_v10  ;;  %v190_v16 = vmul.f32 %v159_v12, %v159_v12  ;;  %v282_v17 = vpop.f32.mrb[3].mxu0 }
 0x119   :  { %253 = vst [vmem:[%s364_s2] sm:$0xff] %v252_v14   ;;  %v180_v18 = vrot.slane %v179_v15, 4  ;;  %v191_v19 = vadd.f32 %v190_v16, %v189_v13 }
 0x11b   :  { %v181_v20 = vadd.f32 %v180_v18, %v179_v15  ;;  %v192_v21 = vrot.slane %v191_v19, 4 }
 0x11d   :  { %v182_v22 = vrot.slane %v181_v20, 2  ;;  %v193_v23 = vadd.f32 %v192_v21, %v191_v19 }
 0x11f   :  { %v183_v24 = vadd.f32 %v182_v22, %v181_v20  ;;  %v194_v25 = vrot.slane %v193_v23, 2 }
 0x121   :  { %v184_v26 = vrot.slane %v183_v24, 1  ;;  %v195_v27 = vadd.f32 %v194_v25, %v193_v23 }
 0x123   :  { %v185_v29 = vadd.f32 %v184_v26, %v183_v24  ;;  %v196_v30 = vrot.slane %v195_v27, 1 }
 0x125   :  { %v186_v32 = vadd.f32 %v185_v29, %v178_v28  ;;  %v197_v33 = vadd.f32 %v196_v30, %v195_v27 }
 0x127   :  { %187 = vst [vmem:[%s363_s3] sm:$0x1] %v186_v32  ;;  %v198_v34 = vadd.f32 %v197_v33, %v188_v31 }
 0x129   :  { %199 = vst [vmem:[%s363_s3 + $0x1] sm:$0x1] %v198_v34 }

// kernel: default_nn_forward.7
= control target key start
LH: loop header
LB: loop body
LE: loop exit
PB: predicated region body
PF: predicated region fallthrough
CT: control target
= control target key end

     0   :  { %s167_s0 = inlined_call_operand.vmem [shape: bf16[16,128], index: 0, kind: input, shape index: {}]   ;;  %s168_s1 = inlined_call_operand.vmem [shape: f32[1,128], index: 1, kind: input, shape index: {}]   ;;  %s169_s2 = inlined_call_operand.vmem [shape: f32[1,128], index: 2, kind: input, shape index: {}]   ;;  %s170_s3 = inlined_call_operand.<no memory space> [shape: f32[1], index: 3, kind: input, shape index: {}]   ;;  %s171_s4 = inlined_call_operand.vmem [shape: f32[16,128], index: 4, kind: output, shape index: {}]  }
   0x1   :  { %v121_v0 = vld [vmem:[%s167_s0] sm:$0xff]   ;;  %v79_v7 = vstv %s170_s3 }
   0x2   :  { %v118_v1 = vld [vmem:[%s168_s1] ss:$0 sm:$0xff]  ;;  %v122_v2 = vunpack.c.l.bf16 %v121_v0  ;;  %v123_v3 = vunpack.c.h.bf16 %v121_v0 }
   0x3   :  { %v119_v4 = vld [vmem:[%s169_s2] ss:$0 sm:$0xff] }
   0x4   :  { %v65_v5 = vmul.f32 %v122_v2, %v118_v1  ;;  %v66_v6 = vmul.f32 %v123_v3, %v118_v1 }
   0x6   :  { %v74_v8 = vadd.f32 %v119_v4, %v65_v5  ;;  %v75_v9 = vadd.f32 %v119_v4, %v66_v6 }
   0x8   :  { %vm77_vm0 = vcmp.gt.f32.partialorder %v74_v8, 0.0  ;;  %v80_v10 = vmul.f32 %v79_v7, %v74_v8  ;;  %vm78_vm1 = vcmp.gt.f32.partialorder %v75_v9, 0.0  ;;  %v81_v11 = vmul.f32 %v79_v7, %v75_v9 }
   0xa   :  { %v82_v12 = vsel %vm77_vm0, %v74_v8, %v80_v10  ;;  %v83_v13 = vsel %vm78_vm1, %v75_v9, %v81_v11 }
   0xb   :  { %84 = vst [vmem:[%s171_s4] sm:$0xff] %v82_v12  ;;  %85 = vst [vmem:[%s171_s4 + $0x8] sm:$0xff] %v83_v13 }

// kernel: default_nn_forward.5
= control target key start
LH: loop header
LB: loop body
LE: loop exit
PB: predicated region body
PF: predicated region fallthrough
CT: control target
= control target key end

     0   :  { %v331_v0 = vmov 0.0   ;;  %vm332_vm0 = vmmov 0   ;;  %s422_s4 = inlined_call_operand.vmem [shape: bf16[128,128], index: 4, kind: input, shape index: {}]   ;;  %s423_s0 = inlined_call_operand.vmem [shape: bf16[16,128], index: 0, kind: input, shape index: {}]   ;;  %s424_s1 = inlined_call_operand.vmem [shape: f32[1,128], index: 1, kind: input, shape index: {}]   ;;  %s425_s2 = inlined_call_operand.vmem [shape: f32[1,128], index: 2, kind: input, shape index: {}]   ;;  %s426_s3 = inlined_call_operand.<no memory space> [shape: f32[1], index: 3, kind: input, shape index: {}]   ;;  %s427_s6 = inlined_call_operand.vmem [shape: f32[8,128], index: 6, kind: output, shape index: {1}]   ;;  %s428_s5 = inlined_call_operand.vmem [shape: bf16[16,128], index: 5, kind: output, shape index: {0}]  }
   0x1   :  { %301 = vmatprep.subr.bf16.mxu0 %v331_v0  ;;  %v323_v1 = vld [vmem:[%s422_s4] sm:$0xff]   ;;  %317 = vmatprep.mubr.msk.bf16.mxu0 %vm332_vm0, %v331_v0  ;;  %v324_v2 = vld [vmem:[%s422_s4 + $0x8] sm:$0xff]   ;;  %v325_v3 = vld [vmem:[%s422_s4 + $0x10] sm:$0xff]   ;;  %v85_v17 = vstv %s426_s3 }
   0x2   :  { %302 = vmatpush3.bf16.xpose.msra.mxu0 %v323_v1  ;;  %v326_v4 = vld [vmem:[%s422_s4 + $0x18] sm:$0xff]   ;;  %v327_v5 = vld [vmem:[%s422_s4 + $0x20] sm:$0xff]   ;;  %v328_v6 = vld [vmem:[%s422_s4 + $0x28] sm:$0xff]   ;;  %210 = vst [vmem:[%s427_s6] sm:$0xff] %v331_v0 }
   0x3   :  { %303 = vmatprep.subr.bf16.mxu0 %v331_v0  ;;  %v284_v7 = vld [vmem:[%s423_s0] sm:$0xff]   ;;  %v329_v11 = vld [vmem:[%s422_s4 + $0x30] sm:$0xff]   ;;  %v330_v18 = vld [vmem:[%s422_s4 + $0x38] sm:$0xff]  }
   0x4   :  { %v285_v8 = vunpack.c.l.bf16 %v284_v7  ;;  %v286_v9 = vunpack.c.h.bf16 %v284_v7  ;;  %v269_v10 = vld [vmem:[%s424_s1] ss:$0 sm:$0xff] }
   0x5   :  { %v270_v14 = vld [vmem:[%s425_s2] ss:$0 sm:$0xff] }
   0x6   :  { %v71_v12 = vmul.f32 %v285_v8, %v269_v10  ;;  %v72_v13 = vmul.f32 %v286_v9, %v269_v10 }
   0x8   :  { %v80_v15 = vadd.f32 %v270_v14, %v71_v12  ;;  %v81_v16 = vadd.f32 %v270_v14, %v72_v13 }
   0x9   :  { %v211_v42 = vld [vmem:[%s427_s6] sm:$0x1]  ;;  %v221_v45 = vld [vmem:[%s427_s6 + $0x1] sm:$0x1] }
   0xa   :  { %304 = vmatpush3.bf16.xpose.msra.mxu0 %v324_v2  ;;  %v86_v19 = vmul.f32 %v85_v17, %v80_v15  ;;  %v87_v20 = vmul.f32 %v85_v17, %v81_v16  ;;  %vm83_vm1 = vcmp.gt.f32.partialorder %v80_v15, 0.0  ;;  %vm84_vm2 = vcmp.gt.f32.partialorder %v81_v16, 0.0 }
   0xb   :  { %305 = vmatprep.subr.bf16.mxu0 %v331_v0 }
   0xc   :  { %v88_v21 = vsel %vm83_vm1, %v80_v15, %v86_v19  ;;  %v89_v22 = vsel %vm84_vm2, %v81_v16, %v87_v20 }
   0xd   :  { %v90_v23 = vpack.c.bf16 %v89_v22, %v88_v21 }
  0x12   :  { %306 = vmatpush3.bf16.xpose.msra.mxu0 %v325_v3 }
  0x13   :  { %307 = vmatprep.subr.bf16.mxu0 %v331_v0 }
  0x1a   :  { %308 = vmatpush3.bf16.xpose.msra.mxu0 %v326_v4 }
  0x1b   :  { %309 = vmatprep.subr.bf16.mxu0 %v331_v0 }
  0x22   :  { %310 = vmatpush3.bf16.xpose.msra.mxu0 %v327_v5 }
  0x23   :  { %311 = vmatprep.subr.bf16.mxu0 %v331_v0 }
  0x2a   :  { %312 = vmatpush3.bf16.xpose.msra.mxu0 %v328_v6 }
  0x2b   :  { %313 = vmatprep.subr.bf16.mxu0 %v331_v0 }
  0x32   :  { %314 = vmatpush3.bf16.xpose.msra.mxu0 %v329_v11 }
  0x33   :  { %315 = vmatprep.subr.bf16.mxu0 %v331_v0 }
  0x3a   :  { %316 = vmatpush3.bf16.xpose.msra.mxu0 %v330_v18 }
  0x41   :  { %318 = vmatmul.mubr.bf16.vlgmr.msra.gmra.mrb[0].mxu0 %v90_v23 }
 0x114   :  { %v189_v24 = vpop.f32.mrb[0].mxu0 }
 0x115   :  { %v319_v25 = vpop.f32.mrb[1].mxu0  ;;  %v222_v27 = vmul.f32 %v189_v24, %v189_v24 }
 0x116   :  { %v192_v26 = vpop.f32.mrb[2].mxu0 }
 0x117   :  { %v290_v28 = vpack.c.bf16 %v192_v26, %v189_v24  ;;  %v212_v29 = vadd.f32 %v192_v26, %v189_v24  ;;  %v223_v30 = vmul.f32 %v192_v26, %v192_v26  ;;  %v320_v31 = vpop.f32.mrb[3].mxu0 }
 0x119   :  { %291 = vst [vmem:[%s428_s5] sm:$0xff] %v290_v28   ;;  %v213_v32 = vrot.slane %v212_v29, 4  ;;  %v224_v33 = vadd.f32 %v223_v30, %v222_v27 }
 0x11b   :  { %v214_v34 = vadd.f32 %v213_v32, %v212_v29  ;;  %v225_v35 = vrot.slane %v224_v33, 4 }
 0x11d   :  { %v215_v36 = vrot.slane %v214_v34, 2  ;;  %v226_v37 = vadd.f32 %v225_v35, %v224_v33 }
 0x11f   :  { %v216_v38 = vadd.f32 %v215_v36, %v214_v34  ;;  %v227_v39 = vrot.slane %v226_v37, 2 }
 0x121   :  { %v217_v40 = vrot.slane %v216_v38, 1  ;;  %v228_v41 = vadd.f32 %v227_v39, %v226_v37 }
 0x123   :  { %v218_v43 = vadd.f32 %v217_v40, %v216_v38  ;;  %v229_v44 = vrot.slane %v228_v41, 1 }
 0x125   :  { %v219_v46 = vadd.f32 %v218_v43, %v211_v42  ;;  %v230_v47 = vadd.f32 %v229_v44, %v228_v41 }
 0x127   :  { %220 = vst [vmem:[%s427_s6] sm:$0x1] %v219_v46  ;;  %v231_v48 = vadd.f32 %v230_v47, %v221_v45 }
 0x129   :  { %232 = vst [vmem:[%s427_s6 + $0x1] sm:$0x1] %v231_v48 }

</bundles_post_ra>
